<compile_context>
chip_gen: v6e
topology: v6e:2x2x1
jax: 0.10.0
libtpu: 0.0.40
codegen_flags: <defaults>
</compile_context>

<pallas_src>
import functools

import jax
import jax.numpy as jnp
from jax.experimental import pallas as pl
from jax.experimental.pallas import tpu as pltpu

LANE = 128
SUBLANE = 8
_MIN_TILE_ROWS = 2048  # 1 MiB f32 block -- already ~85%+ of the HBM roofline


def _round_up(x, m):
    return ((x + m - 1) // m) * m


def _partial_sq_diff_kernel(x_ref, y_ref, o_ref, *, tile_rows, rows, need_mask, n_acc):
    """One grid step: fold a (tile_rows, 128) block of squared differences into
    an independent (8, 128) vreg-shaped partial sum (pure VPU work)."""
    d = x_ref[...].astype(jnp.float32) - y_ref[...].astype(jnp.float32)
    dd = d * d

    def fold(v):
        # (tile_rows, 128) -> (groups//n_acc, n_acc, 8, 128) is layout
        # preserving; summing axis 0 runs n_acc independent accumulation
        # chains (keeps vreg-add latency off the critical path), then a short
        # n_acc-deep fold yields the (8, 128) partial.  No cross-lane reduce.
        groups = tile_rows // SUBLANE
        v = v.reshape(groups // n_acc, n_acc, SUBLANE, LANE)
        v = jnp.sum(v, axis=0)
        return jnp.sum(v, axis=0)

    if not need_mask:
        o_ref[...] = fold(dd)
    else:
        last = pl.num_programs(0) - 1

        @pl.when(pl.program_id(0) != last)
        def _():
            o_ref[...] = fold(dd)

        @pl.when(pl.program_id(0) == last)
        def _():
            # Only the last block can extend past the (un-padded) input; its
            # out-of-bounds rows hold unspecified data, so zero them before
            # folding.  Earlier blocks skip the mask entirely.
            valid = rows - pl.program_id(0) * tile_rows
            row_idx = jax.lax.broadcasted_iota(jnp.int32, (tile_rows, LANE), 0)
            o_ref[...] = fold(jnp.where(row_idx < valid, dd, 0.0))


@functools.partial(jax.jit, static_argnames=("tile_rows",))
def center_loss(outputs, targets, *, tile_rows=8192):
    """sum((outputs - targets)^2) / outputs.shape[0], matching
    nn.MSELoss(reduction='sum')(outputs, targets) / outputs.size(0)."""
    assert outputs.shape == targets.shape
    batch = outputs.shape[0]

    x = outputs.reshape(-1)
    y = targets.reshape(-1)
    n = x.shape[0]
    itemsize = jnp.dtype(outputs.dtype).itemsize

    # Sub-32-bit dtypes pack along sublanes; keep row tiles a multiple of the
    # packed sublane count (8 f32 / 16 bf16 / 32 int8) so blocks stay
    # vreg-shaped on the load path.
    pack = max(1, 4 // max(1, itemsize))
    row_align = SUBLANE * pack

    # Bulk = largest leading chunk that is a whole number of 128-lane rows.
    # Only n % 128 == 0 is needed for the slice to be free (no HBM copy); the
    # (< 128 element) remainder is summed with plain jnp.
    rows = n // LANE
    n_bulk = rows * LANE

    tail = jnp.sum(
        (x[n_bulk:].astype(jnp.float32) - y[n_bulk:].astype(jnp.float32)) ** 2
    )

    if rows == 0:
        total = tail
    else:
        tile_rows = _round_up(max(int(tile_rows), row_align), row_align)
        tile = min(tile_rows, _round_up(rows, row_align))
        # For large inputs keep >= ~4 grid steps so the "parallel" axis can
        # load-balance across both TensorCores on v7x, without dropping below
        # 2048-row (1 MiB f32) blocks that already sit near the HBM roofline.
        if rows >= 4 * _MIN_TILE_ROWS:
            balanced = _round_up(-(-rows // 4), row_align)
            tile = min(tile, max(_MIN_TILE_ROWS, balanced))

        grid_n = pl.cdiv(rows, tile)
        need_mask = (rows % tile) != 0

        # Independent accumulators for the in-kernel sublane fold.
        groups = tile // SUBLANE
        n_acc = 1
        for cand in (8, 4, 2):
            if groups % cand == 0:
                n_acc = cand
                break

        xb = x[:n_bulk].reshape(rows, LANE)  # full-extent slice + free reshape
        yb = y[:n_bulk].reshape(rows, LANE)

        # 2 inputs x 2 pipeline buffers per block (+ headroom).  Raising the
        # scoped-VMEM limit matters on v5e (16 MiB default) with 8192-row
        # tiles; 32+ MiB stays far below every generation's physical VMEM.
        block_bytes = tile * LANE * itemsize
        vmem_limit = max(32 * 1024 * 1024, 4 * block_bytes + (4 << 20))

        kernel = functools.partial(
            _partial_sq_diff_kernel,
            tile_rows=tile,
            rows=rows,
            need_mask=need_mask,
            n_acc=n_acc,
        )
        partials = pl.pallas_call(
            kernel,
            out_shape=jax.ShapeDtypeStruct((grid_n * SUBLANE, LANE), jnp.float32),
            grid=(grid_n,),
            in_specs=[
                pl.BlockSpec((tile, LANE), lambda i: (i, 0)),
                pl.BlockSpec((tile, LANE), lambda i: (i, 0)),
            ],
            # Each block writes an independent (8, 128) partial -> megacore OK.
            out_specs=pl.BlockSpec((SUBLANE, LANE), lambda i: (i, 0)),
            compiler_params=pltpu.CompilerParams(
                dimension_semantics=("parallel",),
                vmem_limit_bytes=int(vmem_limit),
            ),
            cost_estimate=pl.CostEstimate(
                flops=3 * n_bulk,
                bytes_accessed=2 * n_bulk * itemsize + 4 * grid_n * SUBLANE * LANE,
                transcendentals=0,
            ),
        )(xb, yb)
        total = jnp.sum(partials) + tail

    return (total / jnp.float32(batch)).astype(jnp.float32)


if __name__ == "__main__":
    key = jax.random.PRNGKey(0)
    k1, k2 = jax.random.split(key)

    # Small shapes: batch=2, channels=4, spatial=16x16 (NCHW like PyTorch).
    outputs = jax.random.normal(k1, (2, 4, 16, 16), dtype=jnp.float32)
    targets = jax.random.normal(k2, (2, 4, 16, 16), dtype=jnp.float32)

    loss = center_loss(outputs, targets)
    jax.block_until_ready(loss)

    # Pure-JAX reference check.
    ref = jnp.sum((outputs - targets) ** 2) / outputs.shape[0]
    assert jnp.allclose(loss, ref, rtol=1e-5, atol=1e-5), (loss, ref)

    print("KERNEL_OK")
</pallas_src>

<mosaic_0001>
module attributes {stable_mosaic.version = 11 : i64} {
  func.func @_partial_sq_diff_kernel(%arg0: i32, %arg1: memref<16x128xf32, #tpu.memory_space<vmem>>, %arg2: memref<16x128xf32, #tpu.memory_space<vmem>>, %arg3: memref<8x128xf32, #tpu.memory_space<vmem>>) attributes {dimension_semantics = [#tpu.dimension_semantics<parallel>], iteration_bounds = array<i64: 1>, scalar_prefetch = 0 : i64, scratch_operands = 0 : i64, tpu.core_type = #tpu.core_type<tc>, window_params = [{transform_indices = @transform_0, window_bounds = array<i64: 16, 128>}, {transform_indices = @transform_1, window_bounds = array<i64: 16, 128>}, {transform_indices = @transform_2, window_bounds = array<i64: 8, 128>}]} {
    %c0 = arith.constant 0 : index
    %c0_0 = arith.constant 0 : index
    %0 = vector.load %arg1[%c0, %c0_0] : memref<16x128xf32, #tpu.memory_space<vmem>>, vector<16x128xf32>
    %c0_1 = arith.constant 0 : index
    %c0_2 = arith.constant 0 : index
    %1 = vector.load %arg2[%c0_1, %c0_2] : memref<16x128xf32, #tpu.memory_space<vmem>>, vector<16x128xf32>
    %2 = arith.subf %0, %1 : vector<16x128xf32>
    %3 = arith.mulf %2, %2 : vector<16x128xf32>
    %4 = vector.shape_cast %3 : vector<16x128xf32> to vector<1x2x8x128xf32>
    %cst = arith.constant dense<0.000000e+00> : vector<2x8x128xf32>
    %5 = vector.multi_reduction <add>, %4, %cst [0] : vector<1x2x8x128xf32> to vector<2x8x128xf32>
    %cst_3 = arith.constant dense<0.000000e+00> : vector<8x128xf32>
    %6 = vector.multi_reduction <add>, %5, %cst_3 [0] : vector<2x8x128xf32> to vector<8x128xf32>
    %c0_4 = arith.constant 0 : index
    %c0_5 = arith.constant 0 : index
    %7 = vector.load %arg3[%c0_4, %c0_5] : memref<8x128xf32, #tpu.memory_space<vmem>>, vector<8x128xf32>
    tpu.vector_store %arg3[%c0_4, %c0_5], %6 {strides = array<i32>} : memref<8x128xf32, #tpu.memory_space<vmem>>, vector<8x128xf32>,
    return
  }
  func.func @transform_0(%arg0: i32) -> (i32, i32) {
    %c0_i32 = arith.constant 0 : i32
    %c0_i32_0 = arith.constant 0 : i32
    return %arg0, %c0_i32 : i32, i32
  }
  func.func @transform_1(%arg0: i32) -> (i32, i32) {
    %c0_i32 = arith.constant 0 : i32
    %c0_i32_0 = arith.constant 0 : i32
    return %arg0, %c0_i32 : i32, i32
  }
  func.func @transform_2(%arg0: i32) -> (i32, i32) {
    %c0_i32 = arith.constant 0 : i32
    %c0_i32_0 = arith.constant 0 : i32
    return %arg0, %c0_i32 : i32, i32
  }
}

</mosaic_0001>

<bundles_post_ra>
// kernel: center_loss.1
= control target key start
LH: loop header
LB: loop body
LE: loop exit
PB: predicated region body
PF: predicated region fallthrough
CT: control target
= control target key end

     0   :  { %s57_s0 = inlined_call_operand.vmem [shape: f32[16,128], index: 0, kind: input, shape index: {}]   ;;  %s58_s1 = inlined_call_operand.vmem [shape: f32[16,128], index: 1, kind: input, shape index: {}]   ;;  %s59_s2 = inlined_call_operand.vmem [shape: f32[8,128], index: 2, kind: output, shape index: {}]  }
   0x1   :  { %v11_v0 = vld [vmem:[%s57_s0] sm:$0xff]  ;;  %v12_v1 = vld [vmem:[%s57_s0 + $0x8] sm:$0xff] }
   0x2   :  { %v13_v2 = vld [vmem:[%s58_s1] sm:$0xff]  ;;  %v14_v3 = vld [vmem:[%s58_s1 + $0x8] sm:$0xff] }
   0x3   :  { %v15_v4 = vsub.f32 %v11_v0, %v13_v2  ;;  %v16_v5 = vsub.f32 %v12_v1, %v14_v3 }
   0x5   :  { %v17_v6 = vmul.f32 %v15_v4, %v15_v4  ;;  %v18_v7 = vmul.f32 %v16_v5, %v16_v5 }
   0x7   :  { %v21_v8 = vadd.f32 %v18_v7, %v17_v6 }
   0x9   :  { %22 = vst [vmem:[%s59_s2] sm:$0xff] %v21_v8 }

</bundles_post_ra>
